<compile_context>
chip_gen: v7x
topology: tpu7x:2x2x1
jax: 0.10.0
libtpu: 0.0.40
codegen_flags: <defaults>
</compile_context>

<pallas_src>
import functools

import jax
import jax.numpy as jnp
from jax.experimental import pallas as pl
from jax.experimental.pallas import tpu as pltpu

_LANE = 128
_SUBLANE = 8
_VMEM_BUDGET = 28 * 1024 * 1024   # conservative: leaves headroom on v7x (64 MiB)


def _round_up(n: int, m: int) -> int:
    return ((n + m - 1) // m) * m


def _ffn_kernel_resident(x_ref, w1_ref, b1_ref, w2_ref, b2_ref, o_ref):
    # x_ref:  [TM, dim_p]       bf16  (pipelined over the M grid axis)
    # w1_ref: [dim_p, hidden_p] bf16  (resident)
    # b1_ref: [1, hidden_p]     f32   (resident)
    # w2_ref: [hidden_p, dim_p] bf16  (resident)
    # b2_ref: [1, dim_p]        f32   (resident)
    # o_ref:  [TM, dim_p]
    h = jnp.dot(x_ref[...], w1_ref[...],
                preferred_element_type=jnp.float32)          # MXU, f32 accum
    h = jnp.tanh(h + b1_ref[...])                            # bias + tanh in f32 (EUP)
    y = jnp.dot(h.astype(w2_ref.dtype), w2_ref[...],
                preferred_element_type=jnp.float32)          # MXU, f32 accum
    o_ref[...] = (y + b2_ref[...]).astype(o_ref.dtype)


def _ffn_kernel_tiled_h(x_ref, w1_ref, b1_ref, w2_ref, b2_ref, o_ref, acc_ref):
    # Grid = (M tiles, hidden tiles); hidden axis is the reduction of the
    # second matmul, accumulated in an f32 VMEM scratch.
    j = pl.program_id(1)

    @pl.when(j == 0)
    def _():
        acc_ref[...] = jnp.zeros_like(acc_ref)

    h = jnp.dot(x_ref[...], w1_ref[...],
                preferred_element_type=jnp.float32)          # [TM, TH]
    h = jnp.tanh(h + b1_ref[...])
    acc_ref[...] += jnp.dot(h.astype(w2_ref.dtype), w2_ref[...],
                            preferred_element_type=jnp.float32)

    @pl.when(j == pl.num_programs(1) - 1)
    def _():
        o_ref[...] = (acc_ref[...] + b2_ref[...]).astype(o_ref.dtype)


@functools.partial(jax.jit,
                   static_argnames=("block_m", "block_h", "max_resident_mib"))
def feed_forward(x, w1, b1, w2, b2, *, block_m=512, block_h=None,
                 max_resident_mib=20):
    """x: [..., dim]; w1: [dim, hidden]; b1: [hidden]; w2: [hidden, dim]; b2: [dim].

    Weights are stored pre-transposed ((in, out)) relative to torch.nn.Linear.
    """
    orig_shape = x.shape
    orig_dtype = x.dtype
    dim = orig_shape[-1]
    hidden = w1.shape[1]

    x2d = x.reshape(-1, dim)
    m = x2d.shape[0]

    cdt = jnp.bfloat16
    out_bpe = jnp.dtype(orig_dtype).itemsize

    # Lane-align feature dims.
    dim_p = _round_up(dim, _LANE)
    hidden_p0 = _round_up(hidden, _LANE)

    # Path selection: keep full weights resident if they fit comfortably,
    # otherwise stream hidden-dim blocks of w1/w2 with an accumulator.
    resident_w_bytes = 2 * dim_p * hidden_p0 * 2 + (hidden_p0 + dim_p) * 4
    tiled_h = resident_w_bytes > max_resident_mib * 1024 * 1024

    if tiled_h:
        th = block_h if block_h is not None else 512
        th = max(_LANE, _round_up(min(th, hidden_p0), _LANE))
        hidden_p = _round_up(hidden, th)
        n_h = hidden_p // th
    else:
        hidden_p = hidden_p0
        th = hidden_p
        n_h = 1

    def _per_step_bytes(tm):
        if tiled_h:
            return (tm * dim_p * 2 * 2            # x tile (bf16, 2 buffers)
                    + dim_p * th * 2 * 2          # w1 block (2 buffers)
                    + th * dim_p * 2 * 2          # w2 block (2 buffers)
                    + th * 4 * 2                  # b1 block
                    + dim_p * 4                   # b2
                    + tm * dim_p * out_bpe * 2    # out tile (2 buffers)
                    + tm * dim_p * 4              # f32 accumulator scratch
                    + tm * th * 4)                # f32 hidden activation
        return (resident_w_bytes
                + tm * dim_p * 2 * 2              # x tile (2 buffers)
                + tm * dim_p * out_bpe * 2        # out tile (2 buffers)
                + tm * hidden_p * 4               # f32 hidden activation
                + tm * dim_p * 4)                 # f32 pre-cast output

    # Largest M tile (multiple of 8, <= block_m) whose working set fits VMEM.
    tm = max(_SUBLANE, min(_round_up(m, _SUBLANE), _round_up(block_m, _SUBLANE)))
    while tm > _SUBLANE and _per_step_bytes(tm) > _VMEM_BUDGET:
        tm = max(_SUBLANE, _round_up(tm // 2, _SUBLANE))

    m_p = _round_up(m, tm)
    n_m = m_p // tm

    # Zero-pad + cast only when needed (padding is numerically inert:
    # tanh(0)=0 rows/cols multiply into zero weight rows; padded outputs are
    # sliced off below).
    xp = x2d.astype(cdt)
    if (m_p, dim_p) != (m, dim):
        xp = jnp.pad(xp, ((0, m_p - m), (0, dim_p - dim)))
    w1p = w1.astype(cdt)
    if (dim_p, hidden_p) != (dim, hidden):
        w1p = jnp.pad(w1p, ((0, dim_p - dim), (0, hidden_p - hidden)))
    w2p = w2.astype(cdt)
    if (hidden_p, dim_p) != (hidden, dim):
        w2p = jnp.pad(w2p, ((0, hidden_p - hidden), (0, dim_p - dim)))
    b1p = jnp.pad(b1.astype(jnp.float32), (0, hidden_p - hidden)).reshape(1, hidden_p)
    b2p = jnp.pad(b2.astype(jnp.float32), (0, dim_p - dim)).reshape(1, dim_p)

    # Raise the scoped VMEM limit only when the working set approaches the
    # default (16 MiB v5e / 32 MiB v6e,v7x); cap well below v7x's 64 MiB.
    need = _per_step_bytes(tm)
    vmem_limit = None
    if need > 24 * 1024 * 1024:
        vmem_limit = min(int(need * 1.25), 56 * 1024 * 1024)

    w_reads = n_m if tiled_h else 1
    cost = pl.CostEstimate(
        flops=2 * m_p * dim_p * hidden_p * 2,                 # two matmuls
        transcendentals=m_p * hidden_p,                       # tanh
        bytes_accessed=(m_p * dim_p * 2
                        + w_reads * 2 * dim_p * hidden_p * 2
                        + (hidden_p + dim_p) * 4
                        + m_p * dim_p * out_bpe),
    )

    if tiled_h:
        out = pl.pallas_call(
            _ffn_kernel_tiled_h,
            out_shape=jax.ShapeDtypeStruct((m_p, dim_p), orig_dtype),
            grid=(n_m, n_h),
            in_specs=[
                pl.BlockSpec((tm, dim_p), lambda i, j: (i, 0)),   # x: M-tiled
                pl.BlockSpec((dim_p, th), lambda i, j: (0, j)),   # w1: H-streamed
                pl.BlockSpec((1, th), lambda i, j: (0, j)),       # b1: H-streamed
                pl.BlockSpec((th, dim_p), lambda i, j: (j, 0)),   # w2: H-streamed
                pl.BlockSpec((1, dim_p), lambda i, j: (0, 0)),    # b2: constant
            ],
            out_specs=pl.BlockSpec((tm, dim_p), lambda i, j: (i, 0)),
            scratch_shapes=[pltpu.VMEM((tm, dim_p), jnp.float32)],
            compiler_params=pltpu.CompilerParams(
                dimension_semantics=("parallel", "arbitrary"),
                vmem_limit_bytes=vmem_limit,
            ),
            cost_estimate=cost,
        )(xp, w1p, b1p, w2p, b2p)
    else:
        out = pl.pallas_call(
            _ffn_kernel_resident,
            out_shape=jax.ShapeDtypeStruct((m_p, dim_p), orig_dtype),
            grid=(n_m,),
            in_specs=[
                pl.BlockSpec((tm, dim_p), lambda i: (i, 0)),          # x: M-tiled
                pl.BlockSpec(memory_space=pltpu.MemorySpace.VMEM),    # w1: resident
                pl.BlockSpec(memory_space=pltpu.MemorySpace.VMEM),    # b1: resident
                pl.BlockSpec(memory_space=pltpu.MemorySpace.VMEM),    # w2: resident
                pl.BlockSpec(memory_space=pltpu.MemorySpace.VMEM),    # b2: resident
            ],
            out_specs=pl.BlockSpec((tm, dim_p), lambda i: (i, 0)),
            compiler_params=pltpu.CompilerParams(
                dimension_semantics=("parallel",),
                vmem_limit_bytes=vmem_limit,
            ),
            cost_estimate=cost,
        )(xp, w1p, b1p, w2p, b2p)

    return out[:m, :dim].reshape(orig_shape)


def init_params(key, dim, hidden_dim, dtype=jnp.float32):
    """Deterministic init mirroring nn.Linear (weights stored pre-transposed (in, out))."""
    k1, k2, k3, k4 = jax.random.split(key, 4)
    bound1 = 1.0 / (dim ** 0.5)
    bound2 = 1.0 / (hidden_dim ** 0.5)
    w1 = jax.random.uniform(k1, (dim, hidden_dim), dtype, -bound1, bound1)
    b1 = jax.random.uniform(k2, (hidden_dim,), dtype, -bound1, bound1)
    w2 = jax.random.uniform(k3, (hidden_dim, dim), dtype, -bound2, bound2)
    b2 = jax.random.uniform(k4, (dim,), dtype, -bound2, bound2)
    return w1, b1, w2, b2


def _reference(x, w1, b1, w2, b2):
    """Reference with matching bf16-in / f32-accumulate precision."""
    dim = x.shape[-1]
    xb = x.astype(jnp.bfloat16).reshape(-1, dim)
    h = jnp.tanh(jnp.dot(xb, w1.astype(jnp.bfloat16),
                         preferred_element_type=jnp.float32) + b1)
    y = jnp.dot(h.astype(jnp.bfloat16), w2.astype(jnp.bfloat16),
                preferred_element_type=jnp.float32) + b2
    return y.reshape(x.shape).astype(x.dtype)


if __name__ == "__main__":
    key = jax.random.PRNGKey(0)

    # --- Test 1: small shapes, resident-weight path ---
    batch, seq, dim, hidden_dim = 2, 8, 32, 64
    kx, kp, kx2, kp2 = jax.random.split(key, 4)
    x = jax.random.normal(kx, (batch, seq, dim), jnp.float32)
    w1, b1, w2, b2 = init_params(kp, dim, hidden_dim)

    y = feed_forward(x, w1, b1, w2, b2)
    y = jax.block_until_ready(y)
    ref = _reference(x, w1, b1, w2, b2)
    assert y.shape == x.shape and y.dtype == x.dtype
    assert jnp.allclose(y, ref, atol=1e-2, rtol=1e-2)

    # --- Test 2: force the hidden-streamed (accumulator) path ---
    dim2, hidden2 = 128, 384
    x2 = jax.random.normal(kx2, (batch, seq, dim2), jnp.float32)
    w1b, b1b, w2b, b2b = init_params(kp2, dim2, hidden2)

    y2 = feed_forward(x2, w1b, b1b, w2b, b2b,
                      block_h=128, max_resident_mib=0)
    y2 = jax.block_until_ready(y2)
    ref2 = _reference(x2, w1b, b1b, w2b, b2b)
    assert y2.shape == x2.shape and y2.dtype == x2.dtype
    assert jnp.allclose(y2, ref2, atol=1e-2, rtol=1e-2)

    print("KERNEL_OK")
</pallas_src>

<mosaic_0001>
module attributes {stable_mosaic.version = 11 : i64} {
  func.func @_ffn_kernel_resident(%arg0: i32, %arg1: memref<16x128xbf16, #tpu.memory_space<vmem>>, %arg2: memref<128x128xbf16, #tpu.memory_space<vmem>>, %arg3: memref<1x128xf32, #tpu.memory_space<vmem>>, %arg4: memref<128x128xbf16, #tpu.memory_space<vmem>>, %arg5: memref<1x128xf32, #tpu.memory_space<vmem>>, %arg6: memref<16x128xf32, #tpu.memory_space<vmem>>) attributes {dimension_semantics = [#tpu.dimension_semantics<parallel>], iteration_bounds = array<i64: 1>, scalar_prefetch = 0 : i64, scratch_operands = 0 : i64, tpu.core_type = #tpu.core_type<tc>, window_params = [{transform_indices = @transform_0, window_bounds = array<i64: 16, 128>}, {pipeline_mode = #tpu.pipeline_mode<synchronous>, transform_indices = @transform_1, window_bounds = array<i64: 128, 128>}, {pipeline_mode = #tpu.pipeline_mode<synchronous>, transform_indices = @transform_2, window_bounds = array<i64: 1, 128>}, {pipeline_mode = #tpu.pipeline_mode<synchronous>, transform_indices = @transform_3, window_bounds = array<i64: 128, 128>}, {pipeline_mode = #tpu.pipeline_mode<synchronous>, transform_indices = @transform_4, window_bounds = array<i64: 1, 128>}, {transform_indices = @transform_5, window_bounds = array<i64: 16, 128>}]} {
    %c0 = arith.constant 0 : index
    %c0_0 = arith.constant 0 : index
    %0 = vector.load %arg1[%c0, %c0_0] : memref<16x128xbf16, #tpu.memory_space<vmem>>, vector<16x128xbf16>
    %c0_1 = arith.constant 0 : index
    %c0_2 = arith.constant 0 : index
    %1 = vector.load %arg2[%c0_1, %c0_2] : memref<128x128xbf16, #tpu.memory_space<vmem>>, vector<128x128xbf16>
    %cst = arith.constant dense<0.000000e+00> : vector<16x128xf32>
    %2 = tpu.matmul %0, %1, %cst {dimension_numbers = #tpu.dot_dimension_numbers<[1], [0], [0], [1], [0, 0, 1, 1], [], []>} : vector<16x128xbf16>, vector<128x128xbf16>, vector<16x128xf32> -> vector<16x128xf32>
    %c0_3 = arith.constant 0 : index
    %c0_4 = arith.constant 0 : index
    %3 = vector.load %arg3[%c0_3, %c0_4] : memref<1x128xf32, #tpu.memory_space<vmem>>, vector<1x128xf32>
    %4 = vector.broadcast %3 : vector<1x128xf32> to vector<16x128xf32>
    %5 = arith.addf %2, %4 : vector<16x128xf32>
    %6 = math.tanh %5 : vector<16x128xf32>
    %7 = arith.truncf %6 : vector<16x128xf32> to vector<16x128xbf16>
    %c0_5 = arith.constant 0 : index
    %c0_6 = arith.constant 0 : index
    %8 = vector.load %arg4[%c0_5, %c0_6] : memref<128x128xbf16, #tpu.memory_space<vmem>>, vector<128x128xbf16>
    %cst_7 = arith.constant dense<0.000000e+00> : vector<16x128xf32>
    %9 = tpu.matmul %7, %8, %cst_7 {dimension_numbers = #tpu.dot_dimension_numbers<[1], [0], [0], [1], [0, 0, 1, 1], [], []>} : vector<16x128xbf16>, vector<128x128xbf16>, vector<16x128xf32> -> vector<16x128xf32>
    %c0_8 = arith.constant 0 : index
    %c0_9 = arith.constant 0 : index
    %10 = vector.load %arg5[%c0_8, %c0_9] : memref<1x128xf32, #tpu.memory_space<vmem>>, vector<1x128xf32>
    %11 = vector.broadcast %10 : vector<1x128xf32> to vector<16x128xf32>
    %12 = arith.addf %9, %11 : vector<16x128xf32>
    %c0_10 = arith.constant 0 : index
    %c0_11 = arith.constant 0 : index
    %13 = vector.load %arg6[%c0_10, %c0_11] : memref<16x128xf32, #tpu.memory_space<vmem>>, vector<16x128xf32>
    tpu.vector_store %arg6[%c0_10, %c0_11], %12 {strides = array<i32>} : memref<16x128xf32, #tpu.memory_space<vmem>>, vector<16x128xf32>,
    return
  }
  func.func @transform_0(%arg0: i32) -> (i32, i32) {
    %c0_i32 = arith.constant 0 : i32
    %c0_i32_0 = arith.constant 0 : i32
    return %arg0, %c0_i32 : i32, i32
  }
  func.func @transform_1(%arg0: i32) -> (i32, i32) {
    %c0_i32 = arith.constant 0 : i32
    %c0_i32_0 = arith.constant 0 : i32
    %c0_i32_1 = arith.constant 0 : i32
    return %c0_i32, %c0_i32_0 : i32, i32
  }
  func.func @transform_2(%arg0: i32) -> (i32, i32) {
    %c0_i32 = arith.constant 0 : i32
    %c0_i32_0 = arith.constant 0 : i32
    %c0_i32_1 = arith.constant 0 : i32
    return %c0_i32, %c0_i32_0 : i32, i32
  }
  func.func @transform_3(%arg0: i32) -> (i32, i32) {
    %c0_i32 = arith.constant 0 : i32
    %c0_i32_0 = arith.constant 0 : i32
    %c0_i32_1 = arith.constant 0 : i32
    return %c0_i32, %c0_i32_0 : i32, i32
  }
  func.func @transform_4(%arg0: i32) -> (i32, i32) {
    %c0_i32 = arith.constant 0 : i32
    %c0_i32_0 = arith.constant 0 : i32
    %c0_i32_1 = arith.constant 0 : i32
    return %c0_i32, %c0_i32_0 : i32, i32
  }
  func.func @transform_5(%arg0: i32) -> (i32, i32) {
    %c0_i32 = arith.constant 0 : i32
    %c0_i32_0 = arith.constant 0 : i32
    return %arg0, %c0_i32 : i32, i32
  }
}

</mosaic_0001>

<bundles_post_ra>
// kernel: feed_forward.1
= control target key start
LH: loop header
LB: loop body
LE: loop exit
PB: predicated region body
PF: predicated region fallthrough
CT: control target
= control target key end

     0   :  { %v362_v0 = vmov 0.0   ;;  %vm363_vm0 = vmmov 0   ;;  %s457_s1 = inlined_call_operand.vmem [shape: bf16[128,128], index: 1, kind: input, shape index: {}]   ;;  %s458_s3 = inlined_call_operand.vmem [shape: bf16[128,128], index: 3, kind: input, shape index: {}]   ;;  %s459_s0 = inlined_call_operand.vmem [shape: bf16[16,128], index: 0, kind: input, shape index: {}]   ;;  %s460_s2 = inlined_call_operand.vmem [shape: f32[1,128], index: 2, kind: input, shape index: {}]   ;;  %s461_s4 = inlined_call_operand.vmem [shape: f32[1,128], index: 4, kind: input, shape index: {}]   ;;  %s462_s5 = inlined_call_operand.vmem [shape: f32[16,128], index: 5, kind: output, shape index: {}]  }
   0x1   :  { %299 = vmatprep.subr.bf16.mxu0 %v362_v0  ;;  %v341_v1 = vld [vmem:[%s457_s1] sm:$0xff]   ;;  %315 = vmatprep.mubr.msk.bf16.mxu0 %vm363_vm0, %v362_v0  ;;  %v342_v2 = vld [vmem:[%s457_s1 + $0x8] sm:$0xff]   ;;  %v343_v3 = vld [vmem:[%s457_s1 + $0x10] sm:$0xff]  }
   0x2   :  { %319 = vmatprep.subr.bf16.mxu1 %v362_v0  ;;  %335 = vmatprep.mubr.msk.bf16.mxu1 %vm363_vm0, %v362_v0  ;;  %v350_v4 = vld [vmem:[%s458_s3] sm:$0xff]   ;;  %v344_v5 = vld [vmem:[%s457_s1 + $0x18] sm:$0xff]   ;;  %v351_v6 = vld [vmem:[%s458_s3 + $0x8] sm:$0xff]  }
   0x3   :  { %300 = vmatpush3.bf16.msra.mxu0 %v341_v1  ;;  %320 = vmatpush3.bf16.msra.mxu1 %v350_v4  ;;  %v345_v7 = vld [vmem:[%s457_s1 + $0x20] sm:$0xff]   ;;  %v352_v8 = vld [vmem:[%s458_s3 + $0x10] sm:$0xff]   ;;  %v346_v9 = vld [vmem:[%s457_s1 + $0x28] sm:$0xff]  }
   0x4   :  { %301 = vmatprep.subr.bf16.mxu0 %v362_v0  ;;  %321 = vmatprep.subr.bf16.mxu1 %v362_v0  ;;  %v353_v10 = vld [vmem:[%s458_s3 + $0x18] sm:$0xff]   ;;  %v347_v11 = vld [vmem:[%s457_s1 + $0x30] sm:$0xff]   ;;  %v349_v13 = vld [vmem:[%s459_s0] sm:$0xff]  }
   0x5   :  { %v348_v12 = vld [vmem:[%s457_s1 + $0x38] sm:$0xff]   ;;  %v354_v14 = vld [vmem:[%s458_s3 + $0x20] sm:$0xff]   ;;  %v355_v15 = vld [vmem:[%s458_s3 + $0x28] sm:$0xff]  }
   0x6   :  { %v356_v16 = vld [vmem:[%s458_s3 + $0x30] sm:$0xff]   ;;  %v357_v17 = vld [vmem:[%s458_s3 + $0x38] sm:$0xff]   ;;  %v262_v18 = vld [vmem:[%s460_s2] ss:$0 sm:$0xff] }
   0x7   :  { %302 = vmatpush3.bf16.msra.mxu0 %v342_v2  ;;  %322 = vmatpush3.bf16.msra.mxu1 %v351_v6  ;;  %v272_v28 = vld [vmem:[%s461_s4] ss:$0 sm:$0xff] }
   0x8   :  { %303 = vmatprep.subr.bf16.mxu0 %v362_v0  ;;  %323 = vmatprep.subr.bf16.mxu1 %v362_v0 }
   0xb   :  { %304 = vmatpush3.bf16.msra.mxu0 %v343_v3  ;;  %324 = vmatpush3.bf16.msra.mxu1 %v352_v8 }
   0xc   :  { %305 = vmatprep.subr.bf16.mxu0 %v362_v0  ;;  %325 = vmatprep.subr.bf16.mxu1 %v362_v0 }
   0xf   :  { %306 = vmatpush3.bf16.msra.mxu0 %v344_v5  ;;  %326 = vmatpush3.bf16.msra.mxu1 %v353_v10 }
  0x10   :  { %307 = vmatprep.subr.bf16.mxu0 %v362_v0  ;;  %327 = vmatprep.subr.bf16.mxu1 %v362_v0 }
  0x13   :  { %308 = vmatpush3.bf16.msra.mxu0 %v345_v7  ;;  %328 = vmatpush3.bf16.msra.mxu1 %v354_v14 }
  0x14   :  { %309 = vmatprep.subr.bf16.mxu0 %v362_v0  ;;  %329 = vmatprep.subr.bf16.mxu1 %v362_v0 }
  0x17   :  { %310 = vmatpush3.bf16.msra.mxu0 %v346_v9  ;;  %330 = vmatpush3.bf16.msra.mxu1 %v355_v15 }
  0x18   :  { %311 = vmatprep.subr.bf16.mxu0 %v362_v0  ;;  %331 = vmatprep.subr.bf16.mxu1 %v362_v0 }
  0x1b   :  { %312 = vmatpush3.bf16.msra.mxu0 %v347_v11  ;;  %332 = vmatpush3.bf16.msra.mxu1 %v356_v16 }
  0x1c   :  { %313 = vmatprep.subr.bf16.mxu0 %v362_v0  ;;  %333 = vmatprep.subr.bf16.mxu1 %v362_v0 }
  0x1f   :  { %314 = vmatpush3.bf16.msra.mxu0 %v348_v12  ;;  %334 = vmatpush3.bf16.msra.mxu1 %v357_v17 }
  0x22   :  { %316 = vmatmul.mubr.bf16.vlgmr.msra.gmra.mrb[0].mxu0 %v349_v13 }
  0xf5   :  { %v134_v19 = vpop.f32.mrb[0].mxu0 }
  0xf6   :  { %v135_v20 = vadd.f32 %v262_v18, %v134_v19  ;;  %v317_v21 = vpop.f32.mrb[1].mxu0 }
  0xf7   :  { %v137_v22 = vpop.f32.mrb[2].mxu0 }
  0xf8   :  { %v138_v23 = vadd.f32 %v262_v18, %v137_v22  ;;  %v318_v24 = vpop.f32.mrb[3].mxu0  ;;  %358 = vtanh.f32 %v135_v20 }
  0xfa   :  { %360 = vtanh.f32 %v138_v23 }
 0x102   :  { %v359_v25 = vpop.eup %358 }
 0x104   :  { %v361_v26 = vpop.eup %360 }
 0x105   :  { %v143_v27 = vpack.c.bf16 %v361_v26, %v359_v25 }
 0x107   :  { %336 = vmatmul.mubr.bf16.vlgmr.msra.gmra.mrb[0].mxu1 %v143_v27 }
 0x1da   :  { %v249_v29 = vpop.f32.mrb[0].mxu1 }
 0x1db   :  { %v250_v30 = vadd.f32 %v272_v28, %v249_v29  ;;  %v337_v31 = vpop.f32.mrb[1].mxu1 }
 0x1dc   :  { %v252_v32 = vpop.f32.mrb[2].mxu1 }
 0x1dd   :  { %256 = vst [vmem:[%s462_s5] sm:$0xff] %v250_v30  ;;  %v253_v33 = vadd.f32 %v272_v28, %v252_v32  ;;  %v338_v34 = vpop.f32.mrb[3].mxu1 }
 0x1df   :  { %257 = vst [vmem:[%s462_s5 + $0x8] sm:$0xff] %v253_v33 }

</bundles_post_ra>
